<compile_context>
chip_gen: v5e
topology: v5e:2x2
jax: 0.10.0
libtpu: 0.0.40
codegen_flags: <defaults>
</compile_context>

<pallas_src>
import math

import jax
import jax.numpy as jnp
import numpy as np
from jax.experimental import pallas as pl
from jax.experimental.pallas import tpu as pltpu


# ---------------------------------------------------------------------------
# Kernels
# ---------------------------------------------------------------------------
def _resize_kernel(ah_ref, awt_ref, x_ref, o_ref):
    # x_ref: (1, 1, H, W); ah: (Ho, H); awt: (W, Wo); o: (1, 1, Ho, Wo)
    t = jnp.dot(ah_ref[...], x_ref[0, 0], preferred_element_type=jnp.float32)
    y = jnp.dot(t.astype(awt_ref.dtype), awt_ref[...],
                preferred_element_type=jnp.float32)
    o_ref[0, 0] = y.astype(o_ref.dtype)


def _resize_remap_kernel(ah_ref, awt_ref, w_ref, b_ref, x_ref, o_ref, acc_ref):
    # grid = (N, Cin); Cin is the inner reduction ("arbitrary") axis.
    # w_ref: SMEM (Cout, Cin) f32, b_ref: SMEM (Cout,) f32.
    c = pl.program_id(1)

    @pl.when(c == 0)
    def _init():
        acc_ref[...] = jnp.zeros_like(acc_ref)

    t = jnp.dot(ah_ref[...], x_ref[0, 0], preferred_element_type=jnp.float32)
    t = jnp.dot(t.astype(awt_ref.dtype), awt_ref[...],
                preferred_element_type=jnp.float32)          # (Ho, Wo) f32

    cout = acc_ref.shape[0]
    for co in range(cout):                 # static unroll, Cout is small
        acc_ref[co] += w_ref[co, c] * t    # scalar-from-SMEM broadcast FMA (VPU)

    @pl.when(c == pl.num_programs(1) - 1)
    def _finalize():
        for co in range(cout):
            o_ref[0, co] = (acc_ref[co] + b_ref[co]).astype(o_ref.dtype)


# ---------------------------------------------------------------------------
# pallas_call wrappers
# ---------------------------------------------------------------------------
def _vmem_limit(est_bytes):
    # Cap at 48 MiB so v7x (64 MiB physical VMEM / TC) keeps headroom.
    return int(min(48 * 2**20, max(16 * 2**20, 2 * est_bytes)))


def _pallas_resize(x, ah, awt):
    N, C, H, W = x.shape
    Ho, Wo = ah.shape[0], awt.shape[1]
    isz = jnp.dtype(x.dtype).itemsize
    est = 2 * (H * W + Ho * H + W * Wo + Ho * Wo) * isz + (Ho * W + Ho * Wo) * 4
    return pl.pallas_call(
        _resize_kernel,
        out_shape=jax.ShapeDtypeStruct((N, C, Ho, Wo), x.dtype),
        grid=(N, C),
        in_specs=[
            pl.BlockSpec((Ho, H), lambda n, c: (0, 0)),
            pl.BlockSpec((W, Wo), lambda n, c: (0, 0)),
            pl.BlockSpec((1, 1, H, W), lambda n, c: (n, c, 0, 0)),
        ],
        out_specs=pl.BlockSpec((1, 1, Ho, Wo), lambda n, c: (n, c, 0, 0)),
        compiler_params=pltpu.CompilerParams(
            dimension_semantics=("parallel", "parallel"),
            vmem_limit_bytes=_vmem_limit(est),
        ),
    )(ah, awt, x)


def _pallas_resize_remap(x, ah, awt, w, b):
    N, C, H, W = x.shape
    Ho, Wo = ah.shape[0], awt.shape[1]
    cout = w.shape[0]
    isz = jnp.dtype(x.dtype).itemsize
    est = (2 * (H * W + Ho * H + W * Wo) * isz
           + 2 * cout * Ho * Wo * isz + cout * Ho * Wo * 4
           + (Ho * W + Ho * Wo) * 4)
    return pl.pallas_call(
        _resize_remap_kernel,
        out_shape=jax.ShapeDtypeStruct((N, cout, Ho, Wo), x.dtype),
        grid=(N, C),
        in_specs=[
            pl.BlockSpec((Ho, H), lambda n, c: (0, 0)),
            pl.BlockSpec((W, Wo), lambda n, c: (0, 0)),
            pl.BlockSpec(memory_space=pltpu.MemorySpace.SMEM),   # w (Cout, Cin)
            pl.BlockSpec(memory_space=pltpu.MemorySpace.SMEM),   # b (Cout,)
            pl.BlockSpec((1, 1, H, W), lambda n, c: (n, c, 0, 0)),
        ],
        out_specs=pl.BlockSpec((1, cout, Ho, Wo), lambda n, c: (n, 0, 0, 0)),
        scratch_shapes=[pltpu.VMEM((cout, Ho, Wo), jnp.float32)],
        compiler_params=pltpu.CompilerParams(
            dimension_semantics=("parallel", "arbitrary"),
            vmem_limit_bytes=_vmem_limit(est),
        ),
    )(ah, awt, w, b, x)


# ---------------------------------------------------------------------------
# Host-side interpolation matrices / indices (cached per (H, W) on the module)
# ---------------------------------------------------------------------------
def _interp_matrix_1d(out_size, in_size, scale, method):
    A = np.zeros((out_size, in_size), dtype=np.float64)
    if method == "bilinear":  # separable linear, half-pixel coords, scale passed
        for d in range(out_size):
            src = max((d + 0.5) / scale - 0.5, 0.0)
            i0 = min(int(math.floor(src)), in_size - 1)
            i1 = min(i0 + 1, in_size - 1)
            w1 = min(max(src - float(i0), 0.0), 1.0)
            A[d, i0] += 1.0 - w1
            A[d, i1] += w1
    elif method == "area":    # adaptive average pooling semantics
        for d in range(out_size):
            start = (d * in_size) // out_size
            end = -((-(d + 1) * in_size) // out_size)
            A[d, start:end] = 1.0 / (end - start)
    else:
        raise NotImplementedError(method)
    return A


def _composed_interp(in_size, scale, n_stages, method):
    A = np.eye(in_size, dtype=np.float64)
    size = in_size
    for _ in range(n_stages):
        nxt = int(math.floor(size * scale))
        A = _interp_matrix_1d(nxt, size, scale, method) @ A
        size = nxt
    return A, size


def _composed_nearest_indices(in_size, scale, n_stages):
    idx = np.arange(in_size, dtype=np.int64)
    size = in_size
    for _ in range(n_stages):
        nxt = int(math.floor(size * scale))
        sel = np.minimum(np.floor(np.arange(nxt) / scale).astype(np.int64), size - 1)
        idx = idx[sel]
        size = nxt
    return idx, size


# ---------------------------------------------------------------------------
# Module
# ---------------------------------------------------------------------------
class SpatialRescaler:
    """JAX/Pallas equivalent of the PyTorch SpatialRescaler."""

    def __init__(self, n_stages=1, method="bilinear", multiplier=0.5,
                 in_channels=3, out_channels=None, bias=False,
                 key=jax.random.PRNGKey(0)):
        assert n_stages >= 0
        assert method in ["nearest", "linear", "bilinear", "trilinear", "bicubic", "area"]
        # TODO(synk): 'linear'/'trilinear' are 3-D/5-D torch modes and 'bicubic' is
        # not implemented; only 'nearest', 'bilinear', 'area' are supported here.
        if method not in ("nearest", "bilinear", "area"):
            raise NotImplementedError(f"interpolation method {method!r} not implemented")
        self.n_stages = n_stages
        self.method = method
        self.multiplier = multiplier
        self.in_channels = in_channels
        self.remap_output = out_channels is not None
        self.out_channels = out_channels
        self.has_bias = bool(bias)
        self._cache = {}
        if self.remap_output:
            kw, kb = jax.random.split(key)
            bound = 1.0 / math.sqrt(in_channels)            # Conv2d(.,.,1) fan-in
            self.w = jax.random.uniform(kw, (out_channels, in_channels),
                                        jnp.float32, -bound, bound)
            self.b = (jax.random.uniform(kb, (out_channels,), jnp.float32,
                                         -bound, bound) if bias
                      else jnp.zeros((out_channels,), jnp.float32))

    def _plan(self, H, W):
        plan = self._cache.get((H, W))
        if plan is not None:
            return plan
        if self.method == "nearest":
            ih, Ho = _composed_nearest_indices(H, self.multiplier, self.n_stages)
            iw, Wo = _composed_nearest_indices(W, self.multiplier, self.n_stages)
            plan = dict(kind="gather", ho=Ho, wo=Wo,
                        idx_h=jnp.asarray(ih, jnp.int32),
                        idx_w=jnp.asarray(iw, jnp.int32))
            if self.remap_output:
                # conv-only kernel path: identity interp matrices on the small tensor
                plan["ah"] = jnp.eye(Ho, dtype=jnp.float32)
                plan["awt"] = jnp.eye(Wo, dtype=jnp.float32)
        else:
            Ah, Ho = _composed_interp(H, self.multiplier, self.n_stages, self.method)
            Aw, Wo = _composed_interp(W, self.multiplier, self.n_stages, self.method)
            plan = dict(kind="matmul", ho=Ho, wo=Wo,
                        ah=jnp.asarray(Ah, jnp.float32),
                        awt=jnp.asarray(Aw.T, jnp.float32))
        self._cache[(H, W)] = plan
        return plan

    def __call__(self, x):
        N, C, H, W = x.shape
        if self.n_stages == 0 and not self.remap_output:
            return x
        if self.remap_output:
            assert C == self.in_channels, (C, self.in_channels)

        plan = self._plan(H, W)
        cdtype = x.dtype

        if plan["kind"] == "gather":
            # Nearest: pure row/col selection -> strided XLA gather, no matmuls.
            if self.n_stages > 0:
                x = x[:, :, plan["idx_h"], :][:, :, :, plan["idx_w"]]
            if not self.remap_output:
                return x
            return _pallas_resize_remap(x, plan["ah"].astype(cdtype),
                                        plan["awt"].astype(cdtype), self.w, self.b)

        ah = plan["ah"].astype(cdtype)
        awt = plan["awt"].astype(cdtype)
        if self.remap_output:
            return _pallas_resize_remap(x, ah, awt, self.w, self.b)
        return _pallas_resize(x, ah, awt)

    def encode(self, x):
        return self(x)


# ---------------------------------------------------------------------------
if __name__ == "__main__":
    key = jax.random.PRNGKey(0)
    kx, kp1, kp3, kp5 = jax.random.split(key, 4)

    N, Cin, H, W = 2, 4, 16, 16
    x = jax.random.normal(kx, (N, Cin, H, W), jnp.float32)

    # 1) bilinear 0.5x + 1x1 conv remap (no bias)
    m1 = SpatialRescaler(n_stages=1, method="bilinear", multiplier=0.5,
                         in_channels=Cin, out_channels=8, bias=False, key=kp1)
    o1 = jax.block_until_ready(m1(x))
    assert o1.shape == (N, 8, H // 2, W // 2), o1.shape
    # bilinear 0.5x (align_corners=False) on even sizes == 2x2 average pool
    pooled2 = x.reshape(N, Cin, H // 2, 2, W // 2, 2).mean(axis=(3, 5))
    r1 = jnp.einsum("oc,nchw->nohw", m1.w, pooled2)
    np.testing.assert_allclose(np.asarray(o1), np.asarray(r1), rtol=1e-5, atol=1e-5)

    # 2) two composed bilinear 0.5x stages, no channel remap
    m2 = SpatialRescaler(n_stages=2, method="bilinear", multiplier=0.5,
                         in_channels=Cin, out_channels=None)
    o2 = jax.block_until_ready(m2(x))
    assert o2.shape == (N, Cin, H // 4, W // 4), o2.shape
    r2 = x.reshape(N, Cin, H // 4, 4, W // 4, 4).mean(axis=(3, 5))
    np.testing.assert_allclose(np.asarray(o2), np.asarray(r2), rtol=1e-5, atol=1e-5)

    # 3) bilinear remap with bias
    m3 = SpatialRescaler(n_stages=1, method="bilinear", multiplier=0.5,
                         in_channels=Cin, out_channels=5, bias=True, key=kp3)
    o3 = jax.block_until_ready(m3(x))
    assert o3.shape == (N, 5, H // 2, W // 2), o3.shape
    r3 = jnp.einsum("oc,nchw->nohw", m3.w, pooled2) + m3.b[None, :, None, None]
    np.testing.assert_allclose(np.asarray(o3), np.asarray(r3), rtol=1e-5, atol=1e-5)

    # 4) nearest fast path (pure strided gather), no remap
    m4 = SpatialRescaler(n_stages=1, method="nearest", multiplier=0.5,
                         in_channels=Cin, out_channels=None)
    o4 = jax.block_until_ready(m4(x))
    np.testing.assert_allclose(np.asarray(o4), np.asarray(x[:, :, ::2, ::2]),
                               rtol=0, atol=0)

    # 5) nearest + remap (gather, then conv-only kernel path) with bias
    m5 = SpatialRescaler(n_stages=1, method="nearest", multiplier=0.5,
                         in_channels=Cin, out_channels=3, bias=True, key=kp5)
    o5 = jax.block_until_ready(m5(x))
    r5 = jnp.einsum("oc,nchw->nohw", m5.w, x[:, :, ::2, ::2]) + m5.b[None, :, None, None]
    np.testing.assert_allclose(np.asarray(o5), np.asarray(r5), rtol=1e-5, atol=1e-5)

    # 6) bf16 activation path (operands follow input dtype, f32 accumulate)
    o6 = jax.block_until_ready(m1(x.astype(jnp.bfloat16)))
    assert o6.dtype == jnp.bfloat16
    np.testing.assert_allclose(np.asarray(o6, dtype=np.float32), np.asarray(r1),
                               rtol=0.1, atol=0.1)

    print("KERNEL_OK")
</pallas_src>

<mosaic_0001>
module attributes {stable_mosaic.version = 11 : i64} {
  func.func @_resize_remap_kernel(%arg0: i32, %arg1: i32, %arg2: memref<8x16xf32, #tpu.memory_space<vmem>>, %arg3: memref<16x8xf32, #tpu.memory_space<vmem>>, %arg4: memref<8x4xf32, #tpu.memory_space<smem>>, %arg5: memref<8xf32, #tpu.memory_space<smem>>, %arg6: memref<1x1x16x16xf32, #tpu.memory_space<vmem>>, %arg7: memref<1x8x8x8xf32, #tpu.memory_space<vmem>>, %arg8: memref<8x8x8xf32, #tpu.memory_space<vmem>>) attributes {dimension_semantics = [#tpu.dimension_semantics<parallel>, #tpu.dimension_semantics<arbitrary>], iteration_bounds = array<i64: 2, 4>, scalar_prefetch = 0 : i64, scratch_operands = 1 : i64, tpu.core_type = #tpu.core_type<tc>, window_params = [{pipeline_mode = #tpu.pipeline_mode<synchronous>, transform_indices = @transform_0, window_bounds = array<i64: 8, 16>}, {pipeline_mode = #tpu.pipeline_mode<synchronous>, transform_indices = @transform_1, window_bounds = array<i64: 16, 8>}, {transform_indices = @transform_2, window_bounds = array<i64: 8, 4>}, {transform_indices = @transform_3, window_bounds = array<i64: 8>}, {transform_indices = @transform_4, window_bounds = array<i64: 1, 1, 16, 16>}, {transform_indices = @transform_5, window_bounds = array<i64: 1, 8, 8, 8>}]} {
    %c0_i32 = arith.constant 0 : i32
    %0 = arith.cmpi eq, %arg1, %c0_i32 : i32
    %1 = arith.extui %0 : i1 to i32
    %c0_i32_0 = arith.constant 0 : i32
    %2 = arith.cmpi ne, %1, %c0_i32_0 : i32
    scf.if %2 {
      %cst_59 = arith.constant 0.000000e+00 : f32
      %92 = vector.broadcast %cst_59 : f32 to vector<8x8x8xf32>
      %c0_60 = arith.constant 0 : index
      %c0_61 = arith.constant 0 : index
      %c0_62 = arith.constant 0 : index
      %93 = vector.load %arg8[%c0_60, %c0_61, %c0_62] : memref<8x8x8xf32, #tpu.memory_space<vmem>>, vector<8x8x8xf32>
      tpu.vector_store %arg8[%c0_60, %c0_61, %c0_62], %92 {strides = array<i32>} : memref<8x8x8xf32, #tpu.memory_space<vmem>>, vector<8x8x8xf32>,
    } else {
    }
    %c0 = arith.constant 0 : index
    %c0_1 = arith.constant 0 : index
    %3 = vector.load %arg2[%c0, %c0_1] : memref<8x16xf32, #tpu.memory_space<vmem>>, vector<8x16xf32>
    %c0_2 = arith.constant 0 : index
    %c0_3 = arith.constant 0 : index
    %c0_4 = arith.constant 0 : index
    %c0_5 = arith.constant 0 : index
    %4 = vector.load %arg6[%c0_2, %c0_3, %c0_4, %c0_5] : memref<1x1x16x16xf32, #tpu.memory_space<vmem>>, vector<1x1x16x16xf32>
    %5 = vector.shape_cast %4 : vector<1x1x16x16xf32> to vector<16x16xf32>
    %cst = arith.constant dense<0.000000e+00> : vector<8x16xf32>
    %6 = tpu.matmul %3, %5, %cst {dimension_numbers = #tpu.dot_dimension_numbers<[1], [0], [0], [1], [0, 0, 1, 1], [], []>} : vector<8x16xf32>, vector<16x16xf32>, vector<8x16xf32> -> vector<8x16xf32>
    %c0_6 = arith.constant 0 : index
    %c0_7 = arith.constant 0 : index
    %7 = vector.load %arg3[%c0_6, %c0_7] : memref<16x8xf32, #tpu.memory_space<vmem>>, vector<16x8xf32>
    %cst_8 = arith.constant dense<0.000000e+00> : vector<8x8xf32>
    %8 = tpu.matmul %6, %7, %cst_8 {dimension_numbers = #tpu.dot_dimension_numbers<[1], [0], [0], [1], [0, 0, 1, 1], [], []>} : vector<8x16xf32>, vector<16x8xf32>, vector<8x8xf32> -> vector<8x8xf32>
    %c0_9 = arith.constant 0 : index
    %c0_10 = arith.constant 0 : index
    %c0_11 = arith.constant 0 : index
    %9 = vector.load %arg8[%c0_9, %c0_10, %c0_11] : memref<8x8x8xf32, #tpu.memory_space<vmem>>, vector<1x8x8xf32>
    %10 = vector.shape_cast %9 : vector<1x8x8xf32> to vector<8x8xf32>
    %c0_12 = arith.constant 0 : index
    %11 = arith.index_cast %arg1 : i32 to index
    %12 = memref.load %arg4[%c0_12, %11] : memref<8x4xf32, #tpu.memory_space<smem>>
    %13 = vector.broadcast %12 : f32 to vector<8x8xf32>
    %14 = arith.mulf %13, %8 : vector<8x8xf32>
    %15 = arith.addf %10, %14 : vector<8x8xf32>
    %c0_13 = arith.constant 0 : index
    %c0_14 = arith.constant 0 : index
    %c0_15 = arith.constant 0 : index
    %16 = vector.load %arg8[%c0_13, %c0_14, %c0_15] : memref<8x8x8xf32, #tpu.memory_space<vmem>>, vector<1x8x8xf32>
    %17 = vector.shape_cast %16 : vector<1x8x8xf32> to vector<8x8xf32>
    %18 = vector.shape_cast %15 : vector<8x8xf32> to vector<1x8x8xf32>
    tpu.vector_store %arg8[%c0_13, %c0_14, %c0_15], %18 {strides = array<i32>} : memref<8x8x8xf32, #tpu.memory_space<vmem>>, vector<1x8x8xf32>,
    %c1 = arith.constant 1 : index
    %c0_16 = arith.constant 0 : index
    %c0_17 = arith.constant 0 : index
    %19 = vector.load %arg8[%c1, %c0_16, %c0_17] : memref<8x8x8xf32, #tpu.memory_space<vmem>>, vector<1x8x8xf32>
    %20 = vector.shape_cast %19 : vector<1x8x8xf32> to vector<8x8xf32>
    %c1_18 = arith.constant 1 : index
    %21 = arith.index_cast %arg1 : i32 to index
    %22 = memref.load %arg4[%c1_18, %21] : memref<8x4xf32, #tpu.memory_space<smem>>
    %23 = vector.broadcast %22 : f32 to vector<8x8xf32>
    %24 = arith.mulf %23, %8 : vector<8x8xf32>
    %25 = arith.addf %20, %24 : vector<8x8xf32>
    %c1_19 = arith.constant 1 : index
    %c0_20 = arith.constant 0 : index
    %c0_21 = arith.constant 0 : index
    %26 = vector.load %arg8[%c1_19, %c0_20, %c0_21] : memref<8x8x8xf32, #tpu.memory_space<vmem>>, vector<1x8x8xf32>
    %27 = vector.shape_cast %26 : vector<1x8x8xf32> to vector<8x8xf32>
    %28 = vector.shape_cast %25 : vector<8x8xf32> to vector<1x8x8xf32>
    tpu.vector_store %arg8[%c1_19, %c0_20, %c0_21], %28 {strides = array<i32>} : memref<8x8x8xf32, #tpu.memory_space<vmem>>, vector<1x8x8xf32>,
    %c2 = arith.constant 2 : index
    %c0_22 = arith.constant 0 : index
    %c0_23 = arith.constant 0 : index
    %29 = vector.load %arg8[%c2, %c0_22, %c0_23] : memref<8x8x8xf32, #tpu.memory_space<vmem>>, vector<1x8x8xf32>
    %30 = vector.shape_cast %29 : vector<1x8x8xf32> to vector<8x8xf32>
    %c2_24 = arith.constant 2 : index
    %31 = arith.index_cast %arg1 : i32 to index
    %32 = memref.load %arg4[%c2_24, %31] : memref<8x4xf32, #tpu.memory_space<smem>>
    %33 = vector.broadcast %32 : f32 to vector<8x8xf32>
    %34 = arith.mulf %33, %8 : vector<8x8xf32>
    %35 = arith.addf %30, %34 : vector<8x8xf32>
    %c2_25 = arith.constant 2 : index
    %c0_26 = arith.constant 0 : index
    %c0_27 = arith.constant 0 : index
    %36 = vector.load %arg8[%c2_25, %c0_26, %c0_27] : memref<8x8x8xf32, #tpu.memory_space<vmem>>, vector<1x8x8xf32>
    %37 = vector.shape_cast %36 : vector<1x8x8xf32> to vector<8x8xf32>
    %38 = vector.shape_cast %35 : vector<8x8xf32> to vector<1x8x8xf32>
    tpu.vector_store %arg8[%c2_25, %c0_26, %c0_27], %38 {strides = array<i32>} : memref<8x8x8xf32, #tpu.memory_space<vmem>>, vector<1x8x8xf32>,
    %c3 = arith.constant 3 : index
    %c0_28 = arith.constant 0 : index
    %c0_29 = arith.constant 0 : index
    %39 = vector.load %arg8[%c3, %c0_28, %c0_29] : memref<8x8x8xf32, #tpu.memory_space<vmem>>, vector<1x8x8xf32>
    %40 = vector.shape_cast %39 : vector<1x8x8xf32> to vector<8x8xf32>
    %c3_30 = arith.constant 3 : index
    %41 = arith.index_cast %arg1 : i32 to index
    %42 = memref.load %arg4[%c3_30, %41] : memref<8x4xf32, #tpu.memory_space<smem>>
    %43 = vector.broadcast %42 : f32 to vector<8x8xf32>
    %44 = arith.mulf %43, %8 : vector<8x8xf32>
    %45 = arith.addf %40, %44 : vector<8x8xf32>
    %c3_31 = arith.constant 3 : index
    %c0_32 = arith.constant 0 : index
    %c0_33 = arith.constant 0 : index
    %46 = vector.load %arg8[%c3_31, %c0_32, %c0_33] : memref<8x8x8xf32, #tpu.memory_space<vmem>>, vector<1x8x8xf32>
    %47 = vector.shape_cast %46 : vector<1x8x8xf32> to vector<8x8xf32>
    %48 = vector.shape_cast %45 : vector<8x8xf32> to vector<1x8x8xf32>
    tpu.vector_store %arg8[%c3_31, %c0_32, %c0_33], %48 {strides = array<i32>} : memref<8x8x8xf32, #tpu.memory_space<vmem>>, vector<1x8x8xf32>,
    %c4 = arith.constant 4 : index
    %c0_34 = arith.constant 0 : index
    %c0_35 = arith.constant 0 : index
    %49 = vector.load %arg8[%c4, %c0_34, %c0_35] : memref<8x8x8xf32, #tpu.memory_space<vmem>>, vector<1x8x8xf32>
    %50 = vector.shape_cast %49 : vector<1x8x8xf32> to vector<8x8xf32>
    %c4_36 = arith.constant 4 : index
    %51 = arith.index_cast %arg1 : i32 to index
    %52 = memref.load %arg4[%c4_36, %51] : memref<8x4xf32, #tpu.memory_space<smem>>
    %53 = vector.broadcast %52 : f32 to vector<8x8xf32>
    %54 = arith.mulf %53, %8 : vector<8x8xf32>
    %55 = arith.addf %50, %54 : vector<8x8xf32>
    %c4_37 = arith.constant 4 : index
    %c0_38 = arith.constant 0 : index
    %c0_39 = arith.constant 0 : index
    %56 = vector.load %arg8[%c4_37, %c0_38, %c0_39] : memref<8x8x8xf32, #tpu.memory_space<vmem>>, vector<1x8x8xf32>
    %57 = vector.shape_cast %56 : vector<1x8x8xf32> to vector<8x8xf32>
    %58 = vector.shape_cast %55 : vector<8x8xf32> to vector<1x8x8xf32>
    tpu.vector_store %arg8[%c4_37, %c0_38, %c0_39], %58 {strides = array<i32>} : memref<8x8x8xf32, #tpu.memory_space<vmem>>, vector<1x8x8xf32>,
    %c5 = arith.constant 5 : index
    %c0_40 = arith.constant 0 : index
    %c0_41 = arith.constant 0 : index
    %59 = vector.load %arg8[%c5, %c0_40, %c0_41] : memref<8x8x8xf32, #tpu.memory_space<vmem>>, vector<1x8x8xf32>
    %60 = vector.shape_cast %59 : vector<1x8x8xf32> to vector<8x8xf32>
    %c5_42 = arith.constant 5 : index
    %61 = arith.index_cast %arg1 : i32 to index
    %62 = memref.load %arg4[%c5_42, %61] : memref<8x4xf32, #tpu.memory_space<smem>>
    %63 = vector.broadcast %62 : f32 to vector<8x8xf32>
    %64 = arith.mulf %63, %8 : vector<8x8xf32>
    %65 = arith.addf %60, %64 : vector<8x8xf32>
    %c5_43 = arith.constant 5 : index
    %c0_44 = arith.constant 0 : index
    %c0_45 = arith.constant 0 : index
    %66 = vector.load %arg8[%c5_43, %c0_44, %c0_45] : memref<8x8x8xf32, #tpu.memory_space<vmem>>, vector<1x8x8xf32>
    %67 = vector.shape_cast %66 : vector<1x8x8xf32> to vector<8x8xf32>
    %68 = vector.shape_cast %65 : vector<8x8xf32> to vector<1x8x8xf32>
    tpu.vector_store %arg8[%c5_43, %c0_44, %c0_45], %68 {strides = array<i32>} : memref<8x8x8xf32, #tpu.memory_space<vmem>>, vector<1x8x8xf32>,
    %c6 = arith.constant 6 : index
    %c0_46 = arith.constant 0 : index
    %c0_47 = arith.constant 0 : index
    %69 = vector.load %arg8[%c6, %c0_46, %c0_47] : memref<8x8x8xf32, #tpu.memory_space<vmem>>, vector<1x8x8xf32>
    %70 = vector.shape_cast %69 : vector<1x8x8xf32> to vector<8x8xf32>
    %c6_48 = arith.constant 6 : index
    %71 = arith.index_cast %arg1 : i32 to index
    %72 = memref.load %arg4[%c6_48, %71] : memref<8x4xf32, #tpu.memory_space<smem>>
    %73 = vector.broadcast %72 : f32 to vector<8x8xf32>
    %74 = arith.mulf %73, %8 : vector<8x8xf32>
    %75 = arith.addf %70, %74 : vector<8x8xf32>
    %c6_49 = arith.constant 6 : index
    %c0_50 = arith.constant 0 : index
    %c0_51 = arith.constant 0 : index
    %76 = vector.load %arg8[%c6_49, %c0_50, %c0_51] : memref<8x8x8xf32, #tpu.memory_space<vmem>>, vector<1x8x8xf32>
    %77 = vector.shape_cast %76 : vector<1x8x8xf32> to vector<8x8xf32>
    %78 = vector.shape_cast %75 : vector<8x8xf32> to vector<1x8x8xf32>
    tpu.vector_store %arg8[%c6_49, %c0_50, %c0_51], %78 {strides = array<i32>} : memref<8x8x8xf32, #tpu.memory_space<vmem>>, vector<1x8x8xf32>,
    %c7 = arith.constant 7 : index
    %c0_52 = arith.constant 0 : index
    %c0_53 = arith.constant 0 : index
    %79 = vector.load %arg8[%c7, %c0_52, %c0_53] : memref<8x8x8xf32, #tpu.memory_space<vmem>>, vector<1x8x8xf32>
    %80 = vector.shape_cast %79 : vector<1x8x8xf32> to vector<8x8xf32>
    %c7_54 = arith.constant 7 : index
    %81 = arith.index_cast %arg1 : i32 to index
    %82 = memref.load %arg4[%c7_54, %81] : memref<8x4xf32, #tpu.memory_space<smem>>
    %83 = vector.broadcast %82 : f32 to vector<8x8xf32>
    %84 = arith.mulf %83, %8 : vector<8x8xf32>
    %85 = arith.addf %80, %84 : vector<8x8xf32>
    %c7_55 = arith.constant 7 : index
    %c0_56 = arith.constant 0 : index
    %c0_57 = arith.constant 0 : index
    %86 = vector.load %arg8[%c7_55, %c0_56, %c0_57] : memref<8x8x8xf32, #tpu.memory_space<vmem>>, vector<1x8x8xf32>
    %87 = vector.shape_cast %86 : vector<1x8x8xf32> to vector<8x8xf32>
    %88 = vector.shape_cast %85 : vector<8x8xf32> to vector<1x8x8xf32>
    tpu.vector_store %arg8[%c7_55, %c0_56, %c0_57], %88 {strides = array<i32>} : memref<8x8x8xf32, #tpu.memory_space<vmem>>, vector<1x8x8xf32>,
    %c3_i32 = arith.constant 3 : i32
    %89 = arith.cmpi eq, %arg1, %c3_i32 : i32
    %90 = arith.extui %89 : i1 to i32
    %c0_i32_58 = arith.constant 0 : i32
    %91 = arith.cmpi ne, %90, %c0_i32_58 : i32
    scf.if %91 {
      %c0_59 = arith.constant 0 : index
      %c0_60 = arith.constant 0 : index
      %c0_61 = arith.constant 0 : index
      %92 = vector.load %arg8[%c0_59, %c0_60, %c0_61] : memref<8x8x8xf32, #tpu.memory_space<vmem>>, vector<1x8x8xf32>
      %93 = vector.shape_cast %92 : vector<1x8x8xf32> to vector<8x8xf32>
      %c0_62 = arith.constant 0 : index
      %94 = memref.load %arg5[%c0_62] : memref<8xf32, #tpu.memory_space<smem>>
      %95 = vector.broadcast %94 : f32 to vector<8x8xf32>
      %96 = arith.addf %93, %95 : vector<8x8xf32>
      %c0_63 = arith.constant 0 : index
      %c0_64 = arith.constant 0 : index
      %c0_65 = arith.constant 0 : index
      %c0_66 = arith.constant 0 : index
      %97 = vector.load %arg7[%c0_63, %c0_64, %c0_65, %c0_66] : memref<1x8x8x8xf32, #tpu.memory_space<vmem>>, vector<1x1x8x8xf32>
      %98 = vector.shape_cast %97 : vector<1x1x8x8xf32> to vector<8x8xf32>
      %99 = vector.shape_cast %96 : vector<8x8xf32> to vector<1x1x8x8xf32>
      tpu.vector_store %arg7[%c0_63, %c0_64, %c0_65, %c0_66], %99 {strides = array<i32>} : memref<1x8x8x8xf32, #tpu.memory_space<vmem>>, vector<1x1x8x8xf32>,
      %c1_67 = arith.constant 1 : index
      %c0_68 = arith.constant 0 : index
      %c0_69 = arith.constant 0 : index
      %100 = vector.load %arg8[%c1_67, %c0_68, %c0_69] : memref<8x8x8xf32, #tpu.memory_space<vmem>>, vector<1x8x8xf32>
      %101 = vector.shape_cast %100 : vector<1x8x8xf32> to vector<8x8xf32>
      %c1_70 = arith.constant 1 : index
      %102 = memref.load %arg5[%c1_70] : memref<8xf32, #tpu.memory_space<smem>>
      %103 = vector.broadcast %102 : f32 to vector<8x8xf32>
      %104 = arith.addf %101, %103 : vector<8x8xf32>
      %c0_71 = arith.constant 0 : index
      %c1_72 = arith.constant 1 : index
      %c0_73 = arith.constant 0 : index
      %c0_74 = arith.constant 0 : index
      %105 = vector.load %arg7[%c0_71, %c1_72, %c0_73, %c0_74] : memref<1x8x8x8xf32, #tpu.memory_space<vmem>>, vector<1x1x8x8xf32>
      %106 = vector.shape_cast %105 : vector<1x1x8x8xf32> to vector<8x8xf32>
      %107 = vector.shape_cast %104 : vector<8x8xf32> to vector<1x1x8x8xf32>
      tpu.vector_store %arg7[%c0_71, %c1_72, %c0_73, %c0_74], %107 {strides = array<i32>} : memref<1x8x8x8xf32, #tpu.memory_space<vmem>>, vector<1x1x8x8xf32>,
      %c2_75 = arith.constant 2 : index
      %c0_76 = arith.constant 0 : index
      %c0_77 = arith.constant 0 : index
      %108 = vector.load %arg8[%c2_75, %c0_76, %c0_77] : memref<8x8x8xf32, #tpu.memory_space<vmem>>, vector<1x8x8xf32>
      %109 = vector.shape_cast %108 : vector<1x8x8xf32> to vector<8x8xf32>
      %c2_78 = arith.constant 2 : index
      %110 = memref.load %arg5[%c2_78] : memref<8xf32, #tpu.memory_space<smem>>
      %111 = vector.broadcast %110 : f32 to vector<8x8xf32>
      %112 = arith.addf %109, %111 : vector<8x8xf32>
      %c0_79 = arith.constant 0 : index
      %c2_80 = arith.constant 2 : index
      %c0_81 = arith.constant 0 : index
      %c0_82 = arith.constant 0 : index
      %113 = vector.load %arg7[%c0_79, %c2_80, %c0_81, %c0_82] : memref<1x8x8x8xf32, #tpu.memory_space<vmem>>, vector<1x1x8x8xf32>
      %114 = vector.shape_cast %113 : vector<1x1x8x8xf32> to vector<8x8xf32>
      %115 = vector.shape_cast %112 : vector<8x8xf32> to vector<1x1x8x8xf32>
      tpu.vector_store %arg7[%c0_79, %c2_80, %c0_81, %c0_82], %115 {strides = array<i32>} : memref<1x8x8x8xf32, #tpu.memory_space<vmem>>, vector<1x1x8x8xf32>,
      %c3_83 = arith.constant 3 : index
      %c0_84 = arith.constant 0 : index
      %c0_85 = arith.constant 0 : index
      %116 = vector.load %arg8[%c3_83, %c0_84, %c0_85] : memref<8x8x8xf32, #tpu.memory_space<vmem>>, vector<1x8x8xf32>
      %117 = vector.shape_cast %116 : vector<1x8x8xf32> to vector<8x8xf32>
      %c3_86 = arith.constant 3 : index
      %118 = memref.load %arg5[%c3_86] : memref<8xf32, #tpu.memory_space<smem>>
      %119 = vector.broadcast %118 : f32 to vector<8x8xf32>
      %120 = arith.addf %117, %119 : vector<8x8xf32>
      %c0_87 = arith.constant 0 : index
      %c3_88 = arith.constant 3 : index
      %c0_89 = arith.constant 0 : index
      %c0_90 = arith.constant 0 : index
      %121 = vector.load %arg7[%c0_87, %c3_88, %c0_89, %c0_90] : memref<1x8x8x8xf32, #tpu.memory_space<vmem>>, vector<1x1x8x8xf32>
      %122 = vector.shape_cast %121 : vector<1x1x8x8xf32> to vector<8x8xf32>
      %123 = vector.shape_cast %120 : vector<8x8xf32> to vector<1x1x8x8xf32>
      tpu.vector_store %arg7[%c0_87, %c3_88, %c0_89, %c0_90], %123 {strides = array<i32>} : memref<1x8x8x8xf32, #tpu.memory_space<vmem>>, vector<1x1x8x8xf32>,
      %c4_91 = arith.constant 4 : index
      %c0_92 = arith.constant 0 : index
      %c0_93 = arith.constant 0 : index
      %124 = vector.load %arg8[%c4_91, %c0_92, %c0_93] : memref<8x8x8xf32, #tpu.memory_space<vmem>>, vector<1x8x8xf32>
      %125 = vector.shape_cast %124 : vector<1x8x8xf32> to vector<8x8xf32>
      %c4_94 = arith.constant 4 : index
      %126 = memref.load %arg5[%c4_94] : memref<8xf32, #tpu.memory_space<smem>>
      %127 = vector.broadcast %126 : f32 to vector<8x8xf32>
      %128 = arith.addf %125, %127 : vector<8x8xf32>
      %c0_95 = arith.constant 0 : index
      %c4_96 = arith.constant 4 : index
      %c0_97 = arith.constant 0 : index
      %c0_98 = arith.constant 0 : index
      %129 = vector.load %arg7[%c0_95, %c4_96, %c0_97, %c0_98] : memref<1x8x8x8xf32, #tpu.memory_space<vmem>>, vector<1x1x8x8xf32>
      %130 = vector.shape_cast %129 : vector<1x1x8x8xf32> to vector<8x8xf32>
      %131 = vector.shape_cast %128 : vector<8x8xf32> to vector<1x1x8x8xf32>
      tpu.vector_store %arg7[%c0_95, %c4_96, %c0_97, %c0_98], %131 {strides = array<i32>} : memref<1x8x8x8xf32, #tpu.memory_space<vmem>>, vector<1x1x8x8xf32>,
      %c5_99 = arith.constant 5 : index
      %c0_100 = arith.constant 0 : index
      %c0_101 = arith.constant 0 : index
      %132 = vector.load %arg8[%c5_99, %c0_100, %c0_101] : memref<8x8x8xf32, #tpu.memory_space<vmem>>, vector<1x8x8xf32>
      %133 = vector.shape_cast %132 : vector<1x8x8xf32> to vector<8x8xf32>
      %c5_102 = arith.constant 5 : index
      %134 = memref.load %arg5[%c5_102] : memref<8xf32, #tpu.memory_space<smem>>
      %135 = vector.broadcast %134 : f32 to vector<8x8xf32>
      %136 = arith.addf %133, %135 : vector<8x8xf32>
      %c0_103 = arith.constant 0 : index
      %c5_104 = arith.constant 5 : index
      %c0_105 = arith.constant 0 : index
      %c0_106 = arith.constant 0 : index
      %137 = vector.load %arg7[%c0_103, %c5_104, %c0_105, %c0_106] : memref<1x8x8x8xf32, #tpu.memory_space<vmem>>, vector<1x1x8x8xf32>
      %138 = vector.shape_cast %137 : vector<1x1x8x8xf32> to vector<8x8xf32>
      %139 = vector.shape_cast %136 : vector<8x8xf32> to vector<1x1x8x8xf32>
      tpu.vector_store %arg7[%c0_103, %c5_104, %c0_105, %c0_106], %139 {strides = array<i32>} : memref<1x8x8x8xf32, #tpu.memory_space<vmem>>, vector<1x1x8x8xf32>,
      %c6_107 = arith.constant 6 : index
      %c0_108 = arith.constant 0 : index
      %c0_109 = arith.constant 0 : index
      %140 = vector.load %arg8[%c6_107, %c0_108, %c0_109] : memref<8x8x8xf32, #tpu.memory_space<vmem>>, vector<1x8x8xf32>
      %141 = vector.shape_cast %140 : vector<1x8x8xf32> to vector<8x8xf32>
      %c6_110 = arith.constant 6 : index
      %142 = memref.load %arg5[%c6_110] : memref<8xf32, #tpu.memory_space<smem>>
      %143 = vector.broadcast %142 : f32 to vector<8x8xf32>
      %144 = arith.addf %141, %143 : vector<8x8xf32>
      %c0_111 = arith.constant 0 : index
      %c6_112 = arith.constant 6 : index
      %c0_113 = arith.constant 0 : index
      %c0_114 = arith.constant 0 : index
      %145 = vector.load %arg7[%c0_111, %c6_112, %c0_113, %c0_114] : memref<1x8x8x8xf32, #tpu.memory_space<vmem>>, vector<1x1x8x8xf32>
      %146 = vector.shape_cast %145 : vector<1x1x8x8xf32> to vector<8x8xf32>
      %147 = vector.shape_cast %144 : vector<8x8xf32> to vector<1x1x8x8xf32>
      tpu.vector_store %arg7[%c0_111, %c6_112, %c0_113, %c0_114], %147 {strides = array<i32>} : memref<1x8x8x8xf32, #tpu.memory_space<vmem>>, vector<1x1x8x8xf32>,
      %c7_115 = arith.constant 7 : index
      %c0_116 = arith.constant 0 : index
      %c0_117 = arith.constant 0 : index
      %148 = vector.load %arg8[%c7_115, %c0_116, %c0_117] : memref<8x8x8xf32, #tpu.memory_space<vmem>>, vector<1x8x8xf32>
      %149 = vector.shape_cast %148 : vector<1x8x8xf32> to vector<8x8xf32>
      %c7_118 = arith.constant 7 : index
      %150 = memref.load %arg5[%c7_118] : memref<8xf32, #tpu.memory_space<smem>>
      %151 = vector.broadcast %150 : f32 to vector<8x8xf32>
      %152 = arith.addf %149, %151 : vector<8x8xf32>
      %c0_119 = arith.constant 0 : index
      %c7_120 = arith.constant 7 : index
      %c0_121 = arith.constant 0 : index
      %c0_122 = arith.constant 0 : index
      %153 = vector.load %arg7[%c0_119, %c7_120, %c0_121, %c0_122] : memref<1x8x8x8xf32, #tpu.memory_space<vmem>>, vector<1x1x8x8xf32>
      %154 = vector.shape_cast %153 : vector<1x1x8x8xf32> to vector<8x8xf32>
      %155 = vector.shape_cast %152 : vector<8x8xf32> to vector<1x1x8x8xf32>
      tpu.vector_store %arg7[%c0_119, %c7_120, %c0_121, %c0_122], %155 {strides = array<i32>} : memref<1x8x8x8xf32, #tpu.memory_space<vmem>>, vector<1x1x8x8xf32>,
    } else {
    }
    return
  }
  func.func @transform_0(%arg0: i32, %arg1: i32) -> (i32, i32) {
    %c0_i32 = arith.constant 0 : i32
    %c0_i32_0 = arith.constant 0 : i32
    %c0_i32_1 = arith.constant 0 : i32
    return %c0_i32, %c0_i32_0 : i32, i32
  }
  func.func @transform_1(%arg0: i32, %arg1: i32) -> (i32, i32) {
    %c0_i32 = arith.constant 0 : i32
    %c0_i32_0 = arith.constant 0 : i32
    %c0_i32_1 = arith.constant 0 : i32
    return %c0_i32, %c0_i32_0 : i32, i32
  }
  func.func @transform_2(%arg0: i32, %arg1: i32) -> (i32, i32) {
    %c0_i32 = arith.constant 0 : i32
    %c0_i32_0 = arith.constant 0 : i32
    %c0_i32_1 = arith.constant 0 : i32
    return %c0_i32, %c0_i32_0 : i32, i32
  }
  func.func @transform_3(%arg0: i32, %arg1: i32) -> i32 {
    %c0_i32 = arith.constant 0 : i32
    %c0_i32_0 = arith.constant 0 : i32
    return %c0_i32 : i32
  }
  func.func @transform_4(%arg0: i32, %arg1: i32) -> (i32, i32, i32, i32) {
    %c0_i32 = arith.constant 0 : i32
    %c0_i32_0 = arith.constant 0 : i32
    %c0_i32_1 = arith.constant 0 : i32
    return %arg0, %arg1, %c0_i32, %c0_i32_0 : i32, i32, i32, i32
  }
  func.func @transform_5(%arg0: i32, %arg1: i32) -> (i32, i32, i32, i32) {
    %c0_i32 = arith.constant 0 : i32
    %c0_i32_0 = arith.constant 0 : i32
    %c0_i32_1 = arith.constant 0 : i32
    %c0_i32_2 = arith.constant 0 : i32
    return %arg0, %c0_i32, %c0_i32_0, %c0_i32_1 : i32, i32, i32, i32
  }
}

</mosaic_0001>

<bundles_post_ra>
// kernel: tpu_custom_call.1
= control target key start
LH: loop header
LB: loop body
LE: loop exit
PB: predicated region body
PF: predicated region fallthrough
CT: control target
= control target key end

     0   :  { %s1281_s0 = inlined_call_operand.vmem [shape: f32[8,16], index: 0, kind: input, shape index: {}]   ;;  %s1282_s1 = inlined_call_operand.vmem [shape: f32[16,8], index: 1, kind: input, shape index: {}]   ;;  %s1283_s2 = inlined_call_operand.vmem [shape: f32[8,4], index: 2, kind: input, shape index: {}]   ;;  %s1284_s3 = inlined_call_operand.vmem [shape: f32[8], index: 3, kind: input, shape index: {}]   ;;  %s1285_s4 = inlined_call_operand.hbm [shape: f32[2,4,16,16], index: 4, kind: input, shape index: {}]   ;;  %s1286_s5 = inlined_call_operand.hbm [shape: f32[2,8,8,8], index: 5, kind: output, shape index: {}]  }
   0x1   :  { %1301 = sst [smem:[#allocation24_spill]] %s1281_s0 }
   0x2   :  { %1302 = sst [smem:[#allocation25_spill]] %s1282_s1 }
   0x3   :  { %1303 = sst [smem:[#allocation26_spill]] %s1283_s2 }
   0x4   :  { %1304 = sst [smem:[#allocation27_spill]] %s1284_s3 }
   0x5   :  { %1305 = sst [smem:[#allocation28_spill]] %s1285_s4 }
   0x6   :  { %1306 = sst [smem:[#allocation29_spill]] %s1286_s5 }
   0x7   :  { %10 = vsyncpa [#allocation6], 0 }
   0x8   :  { %11 = vsyncpa [#allocation8], 0 }
   0x9   :  { %12 = vsyncpa [#allocation4], 0 }
   0xa   :  { %14 = vsyncpa [#allocation4 + $0x1], 0 }
   0xb   :  { %15 = vsyncpa [#allocation5], 0 }
   0xc   :  { %17 = vsyncpa [#allocation5 + $0x1], 0  ;;  %s1027_s18 = smov 0   ;;  %s1029_s19 = smov 0  }
   0xd   :  { %s1031_s20 = smov 0   ;;  %s1033_s21 = smov 0  }
   0xe   :  { %s1035_s22 = smov 0   ;;  %s1037_s23 = smov 0  }
   0xf   :  { %s1039_s24 = smov 0   ;;  %s1041_s25 = smov 0  }
  0x10   :  { %s1043_s26 = smov 0   ;;  %s1045_s27 = smov 0  }
  0x11   :  { %s1047_s28 = smov 0  }
  0x12 LB: > { %1307 = sst [smem:[#allocation15_spill]] %s948_s18  ;;  %s610_s29 = sadd.s32 4294967295, %s988_s28   ;;  %s988_s28 = sphi %s1047_s28, %s23_s28   ;;  %s984_s27 = sphi %s1045_s27, %s1341_s27   ;;  %s980_s26 = sphi %s1043_s26, %s1348_s26   ;;  %s976_s25 = sphi %s1041_s25, %s1339_s25   ;;  %s972_s24 = sphi %s1039_s24, %s1338_s24   ;;  %s968_s23 = sphi %s1037_s23, %s1347_s23   ;;  %s964_s22 = sphi %s1035_s22, %s1346_s22   ;;  %s960_s21 = sphi %s1033_s21, %s1345_s21   ;;  %s956_s20 = sphi %s1031_s20, %s1344_s20   ;;  %s952_s19 = sphi %s1029_s19, %s1343_s19   ;;  %s948_s18 = sphi %s1027_s18, %s1342_s18  }
  0x13   : > { %1308 = sst [smem:[#allocation16_spill]] %s976_s25  ;;  %s611_s30 = sadd.s32 4294967294, %s988_s28  }
  0x14   : > { %1309 = sst [smem:[#allocation17_spill]] %s980_s26  ;;  %p135_p0 = scmp.ne.s32.totalorder %s968_s23, %s964_s22 }
  0x15   : > { %1310 = sst [smem:[#allocation18_spill]] %s984_s27  ;;  %p136_p1 = scmp.eq.s32.totalorder %s988_s28, 0 }
  0x16   : > { %1311 = sst [smem:[#allocation19_spill]] %s988_s28  ;;  %p141_p2 = scmp.ne.s32.totalorder %s964_s22, %s960_s21 }
  0x17   : > { %p1087_p3 = scmp.eq.s32.totalorder %s610_s29, 0  ;;  %p1092_p4 = por %p136_p1, %p135_p0 }
  0x18   : > { %p164_p5 = scmp.ne.s32.totalorder %s956_s20, %s952_s19  ;;  %p165_p7 = scmp.eq.s32.totalorder %s610_s29, 7 }
  0x19   : > { %p1100_p6 = por %p1087_p3, %p141_p2  ;;  %p170_p8 = scmp.ne.s32.totalorder %s952_s19, %s948_s18 }
  0x1a   : > { %p171_p9 = scmp.eq.s32.totalorder %s611_s30, 7  ;;  %p1106_p10 = por %p165_p7, %p164_p5 }
  0x1b   : > { %p612_p11 = scmp.ge.s32.totalorder %s988_s28, 1  ;;  %p178_p13 = scmp.lt.s32.totalorder %s988_s28, 9 }
  0x1c   : > { %s1315_s11 = scalar_select %p1106_p10, 1, 0 }
  0x1d   : > { %p1111_p12 = por %p171_p9, %p170_p8  ;;  %s1319_s2 = sld [smem:[#allocation26_spill]] }
  0x1e   : > { %1316 = sst [smem:[#allocation20_spill]] %s1315_s11  ;;  %p1119_p0 = pnand %p612_p11, %p178_p13 }
  0x1f   : > { %s1317_s12 = scalar_select %p1111_p12, 1, 0 }
  0x20   : > { %p682_p1 = pneg %p1119_p0  ;;  %p699_p2 = scmp.lt.s32.totalorder %s988_s28, 8 }
  0x21   : > { %1318 = sst [smem:[#allocation21_spill]] %s1317_s12  ;;  %s990_s13 = smov [#allocation3]  }
  0x22   : > { %s1321_s3 = sld [smem:[#allocation27_spill]]  ;;  %p683_p5 = pnand %p682_p1, %p1087_p3 }
  0x23   : > { %s196_s15 = sshll.u32 %s1319_s2, 4  ;;  %p1133_p7 = pnand %p699_p2, %p1092_p4  ;;  %s197_s15 = int_to_ptr.vmem [resolvable:$true] %s196_s15 }
  0x24   : > { %685 = dma.vmem_to_smem (!%p683_p5), %s197_s15, 128, %s990_s13, [#allocation6]  }
  0x25   : > { %s991_s14 = smov [#allocation7]   ;;  %s32_s6 = sadd.s32 1, %s980_s26 }
  0x26   : > { %p33_p8 = scmp.ge.s32.totalorder %s32_s6, 4  ;;  %s35_s8 = sadd.s32 1, %s984_s27 }
  0x27   : > { %s217_s17 = sand.u32 1, %s968_s23   ;;  %s617_s21 = sshll.u32 %s980_s26, 1 }
  0x28   : > { %s206_s29 = sshll.u32 %s1321_s3, 4  ;;  %s1350_s6 = smov (%p33_p8, %s32_s6), 0  ;;  %s207_s29 = int_to_ptr.vmem [resolvable:$true] %s206_s29 }
  0x29   : > { %688 = dma.vmem_to_smem (!%p683_p5), %s207_s29, 16, %s991_s14, [#allocation8]  }
  0x2a   : > { %1323 = sst [smem:[#allocation22_spill]] %s1350_s6  ;;  %s1352_s8 = smov (!%p33_p8, %s35_s8), %s984_s27 }
  0x2b   : > { %s124_s9 = ssub.s32 %s980_s26, %s1350_s6  ;;  %p37_p4 = scmp.ge.s32.totalorder %s1352_s8, 2 }
  0x2c   : > { %s616_s2 = sshll.u32 %s217_s17, 4  ;;  %s618_s15 = sshll.u32 %s984_s27, 3 }
  0x2d   : > { %s1354_s8 = smov (%p37_p4, %s1352_s8), 0  ;;  %s226_s29 = sadd.s32 %s618_s15, %s617_s21 }
  0x2e   : > { %1324 = sst [smem:[#allocation23_spill]] %s1354_s8  ;;  %s221_s13 = scalar_lea.vmem [#allocation9], %s616_s2 }
  0x2f   : > { %s231_s14 = sshll.u32 %s221_s13, 4  ;;  %s123_s3 = ssub.s32 %s984_s27, %s1354_s8  ;;  %s232_s14 = int_to_ptr.vmem [resolvable:$true] %s231_s14 }
  0x30   : > { %s619_s12 = sshll.u32 %s226_s29, 3  ;;  %s125_s18 = sor.u32 %s124_s9, %s123_s3 }
  0x31   : > { %p152_p9 = scmp.eq.s32.totalorder %s123_s3, 0  ;;  %p126_p11 = scmp.eq.s32.totalorder %s125_s18, 0 }
  0x32   : > { %s1325_s4 = sld [smem:[#allocation28_spill]]  ;;  %s1326_s6 = sadd.s32 1, %s956_s20 }
  0x33   : > { %s1157_s26 = scalar_select %p152_p9, %s956_s20, %s1326_s6  }
  0x34   : > { %s1327_s25 = sadd.s32 1, %s968_s23  ;;  %s218_s2 = scalar_lea.sflag [#allocation4], %s217_s17 }
  0x35   : > { %s1162_s1 = scalar_select %p126_p11, %s968_s23, %s1327_s25  }
  0x36   : > { %s992_s21 = smov 128   ;;  %s993_s15 = smov 8  }
  0x37   : > { %243 = sbr.rel (%p1119_p0) target bundleno = 389 (0x185), region = 40 }
  0x38   : > { %s228_s11 = scalar_lea.hbm %s1325_s4, %s619_s12 }
  0x39   : > { %s229_s0 = sshll.u32 %s228_s11, 4  ;;  %s230_s0 = int_to_ptr.hbm [resolvable:$true] %s229_s0 }
  0x3a   : > { %692 = dma.hbm_to_vmem [thread:$0]  (!%p1133_p7), %s230_s0, 256, %s232_s14, %s218_s2, %s992_s21, %s992_s21, %s993_s15  }
  0x3c   : > { %931 = dma.done.wait (%p1087_p3), [#allocation6], 128  }
  0x3d   : > { %933 = vsyncadd (%p1087_p3), [#allocation6], 4294967168 }
  0x3e   : > { %935 = dma.done.wait (%p1087_p3), [#allocation8], 16  }
  0x3f   : > { %937 = vsyncadd (%p1087_p3), [#allocation8], 4294967280  ;;  %s255_s3 = sand.u32 1, %s964_s22  }
  0x40   : > { %s623_s5 = sshll.u32 %s255_s3, 4  ;;  %s256_s0 = scalar_lea.sflag [#allocation4], %s255_s3 }
  0x41   : > { %s259_s18 = scalar_lea.vmem [#allocation9], %s623_s5 }
  0x42   : > { %939 = dma.done.wait (%p1100_p6), %s256_s0, 256  }
  0x43   : > { %941 = vsyncadd (%p1100_p6), %s256_s0, 4294967040 }
  0x44   : > { %265 = sfence }
  0x45   : > { %s1297_s25 = sand.u32 1, %s952_s19   ;;  %p625_p3 = scmp.ne.s32.totalorder %s972_s24, 0 }
  0x46   : > { %s624_s28 = sshll.u32 %s1297_s25, 6 }
  0x47   : > { %s1184_s6 = scalar_lea.vmem [#allocation10], %s624_s28  ;;  %291 = sbr.rel (%p625_p3) target bundleno = 85 (0x55), region = 56 }
  0x4c   : > { %vm292_vm0 = vcmask 64512   ;;  %v994_v0 = vmov 0.0  }
  0x4d   : > { %293 = vst.msk [vmem:[#allocation2] sm:$0xff] %vm292_vm0, %v994_v0 }
  0x4e   : > { %294 = vst.msk [vmem:[#allocation2 + $0x8] sm:$0xff] %vm292_vm0, %v994_v0 }
  0x4f   : > { %295 = vst.msk [vmem:[#allocation2 + $0x10] sm:$0xff] %vm292_vm0, %v994_v0 }
  0x50   : > { %296 = vst.msk [vmem:[#allocation2 + $0x18] sm:$0xff] %vm292_vm0, %v994_v0 }
  0x51   : > { %297 = vst.msk [vmem:[#allocation2 + $0x20] sm:$0xff] %vm292_vm0, %v994_v0 }
  0x52   : > { %298 = vst.msk [vmem:[#allocation2 + $0x28] sm:$0xff] %vm292_vm0, %v994_v0 }
  0x53   : > { %299 = vst.msk [vmem:[#allocation2 + $0x30] sm:$0xff] %vm292_vm0, %v994_v0 }
  0x54   : > { %300 = vst.msk [vmem:[#allocation2 + $0x38] sm:$0xff] %vm292_vm0, %v994_v0 }
  0x55 PF: > { %v303_v1 = vld [vmem:[%s259_s18 + $0x8] sm:$0xff]  ;;  %v302_v2 = vld [vmem:[%s259_s18] sm:$0xff]  ;;  %s1328_s11 = sld [smem:[#allocation24_spill]]  ;;  %vm304_vm1 = vcmask 130048   ;;  %s362_s29 = sshra.s32 %s972_s24, 7  ;;  %vm358_vm2 = vcmask 64512  }
  0x56   : > { %322 = vmatpush.msra.mxu0 %v303_v1  ;;  %s1329_s30 = sld [smem:[#allocation25_spill]]  ;;  %s655_s13 = sshll.u32 %s362_s29, 7  ;;  %v353_v14 = vld [vmem:[#allocation2] sm:$0xff]  ;;  %v361_v15 = vld [vmem:[#allocation2 + $0x8] sm:$0xff]  ;;  %v375_v16 = vld [vmem:[#allocation2 + $0x10] sm:$0xff] }
  0x57   : > { %s656_s14 = sadd.s32 128, %s655_s13  ;;  %s367_s2 = sand.u32 127, %s972_s24  ;;  %v385_v22 = vld [vmem:[#allocation2 + $0x18] sm:$0xff] }
  0x58   : > { %323 = vmatpush.msra.mxu0 %v302_v2  ;;  %s658_s21 = sadd.s32 256, %s655_s13  ;;  %s368_s15 = sadd.s32 %s656_s14, %s367_s2  ;;  %v395_v24 = vld [vmem:[#allocation2 + $0x20] sm:$0xff] }
  0x59   : > { %s1199_s3 = sld [smem:[#allocation3 + %s972_s24]]  ;;  %s660_s5 = sadd.s32 384, %s655_s13  ;;  %v405_v30 = vld [vmem:[#allocation2 + $0x28] sm:$0xff] }
  0x5a   : > { %s378_s0 = sadd.s32 %s658_s21, %s367_s2  ;;  %s662_s18 = sadd.s32 512, %s655_s13  ;;  %v415_v33 = vld [vmem:[#allocation2 + $0x30] sm:$0xff] }
  0x5b   : > { %v301_v3 = vld [vmem:[%s1328_s11] sm:$0xff]  ;;  %s369_s28 = sld [smem:[#allocation3 + %s368_s15]]  ;;  %s664_s7 = sadd.s32 640, %s655_s13  ;;  %v425_v36 = vld [vmem:[#allocation2 + $0x38] sm:$0xff] }
  0x5c   : > { %v329_v4 = vld [vmem:[%s1329_s30 + $0x8] sm:$0xff]  ;;  %626 = vmatmul.msk.f32.vlgmr.msra.gmra.mxu0 %vm304_vm1, %v301_v3  ;;  %v328_v5 = vld [vmem:[%s1329_s30] sm:$0xff]  ;;  %s388_s10 = sadd.s32 %s660_s5, %s367_s2  ;;  %s666_s11 = sadd.s32 768, %s655_s13 }
  0x5d   : > { %347 = vmatpush.msra.mxu1 %v329_v4  ;;  %s398_s12 = sadd.s32 %s662_s18, %s367_s2  ;;  %s668_s16 = sadd.s32 896, %s655_s13 }
  0x5e   : > { %s379_s17 = sld [smem:[#allocation3 + %s378_s0]]  ;;  %s408_s9 = sadd.s32 %s664_s7, %s367_s2 }
  0x5f   : > { %348 = vmatpush.msra.mxu1 %v328_v5  ;;  %s389_s25 = sld [smem:[#allocation3 + %s388_s10]]  ;;  %s418_s29 = sadd.s32 %s666_s11, %s367_s2  ;;  %v355_v7 = vstv %s1199_s3 }
  0x60   : > { %s399_s4 = sld [smem:[#allocation3 + %s398_s12]]  ;;  %s428_s30 = sadd.s32 %s668_s16, %s367_s2 }
  0x61   : > { %s409_s8 = sld [smem:[#allocation3 + %s408_s9]]  ;;  %v370_v8 = vstv %s369_s28  ;;  %p635_p6 = scmp.ne.s32.totalorder %s972_s24, 3 }
  0x62   : > { %s419_s14 = sld [smem:[#allocation3 + %s418_s29]] }
  0x63   : > { %s429_s27 = sld [smem:[#allocation3 + %s428_s30]] }
  0x64   : > { %v380_v9 = vstv %s379_s17  ;;  %s642_s30 = sld [smem:[#allocation7 + $0x4]] (!%p635_p6) }
  0x65   : > { %v390_v10 = vstv %s389_s25  ;;  %s640_s25 = sld [smem:[#allocation7 + $0x3]] (!%p635_p6) }
  0x66   : > { %v400_v11 = vstv %s399_s4  ;;  %s439_s4 = sld [smem:[#allocation7]] (!%p635_p6) }
  0x67   : > { %v410_v12 = vstv %s409_s8  ;;  %s638_s8 = sld [smem:[#allocation7 + $0x2]] (!%p635_p6) }
  0x68   : > { %v420_v17 = vstv %s419_s14  ;;  %s644_s13 = sld [smem:[#allocation7 + $0x5]] (!%p635_p6) }
  0x69   : > { %v430_v18 = vstv %s429_s27  ;;  %s636_s27 = sld [smem:[#allocation7 + $0x1]] (!%p635_p6) }
  0x6a   : > { %s646_s2 = sld [smem:[#allocation7 + $0x6]] (!%p635_p6) }
  0x6b   : > { %s648_s21 = sld [smem:[#allocation7 + $0x7]] (!%p635_p6) }
  0xd9   : > { %v325_v6 = vpop.f32.mrf.mxu0 }
  0xda   : > { %627 = vmatmul.msk.f32.vlgmr.msra.gmra.mxu1 %vm304_vm1, %v325_v6 }
 0x157   : > { %v350_v13 = vpop.f32.mrf.mxu1 }
 0x158   : > { %v356_v19 = vmul.f32 %v355_v7, %v350_v13  ;;  %v371_v20 = vmul.f32 %v370_v8, %v350_v13  ;;  %v381_v21 = vmul.f32 %v380_v9, %v350_v13  ;;  %v391_v23 = vmul.f32 %v390_v10, %v350_v13 }
 0x159   : > { %v401_v25 = vmul.f32 %v400_v11, %v350_v13  ;;  %v411_v26 = vmul.f32 %v410_v12, %v350_v13  ;;  %v421_v31 = vmul.f32 %v420_v17, %v350_v13  ;;  %v431_v34 = vmul.f32 %v430_v18, %v350_v13 }
 0x15a   : > { %v357_v27 = vadd.f32 %v356_v19, %v353_v14  ;;  %v372_v28 = vadd.f32 %v371_v20, %v361_v15  ;;  %v382_v29 = vadd.f32 %v381_v21, %v375_v16  ;;  %v392_v32 = vadd.f32 %v391_v23, %v385_v22 }
 0x15b   : > { %v402_v35 = vadd.f32 %v401_v25, %v395_v24  ;;  %v412_v37 = vadd.f32 %v411_v26, %v405_v30  ;;  %v422_v38 = vadd.f32 %v421_v31, %v415_v33  ;;  %v432_v39 = vadd.f32 %v431_v34, %v425_v36 }
 0x15c   : > { %359 = vst.msk [vmem:[#allocation2] sm:$0xff] %vm358_vm2, %v357_v27 }
 0x15d   : > { %373 = vst.msk [vmem:[#allocation2 + $0x8] sm:$0xff] %vm358_vm2, %v372_v28 }
 0x15e   : > { %383 = vst.msk [vmem:[#allocation2 + $0x10] sm:$0xff] %vm358_vm2, %v382_v29 }
 0x15f   : > { %393 = vst.msk [vmem:[#allocation2 + $0x18] sm:$0xff] %vm358_vm2, %v392_v32  ;;  %437 = sbr.rel (%p635_p6) target bundleno = 367 (0x16f), region = 60 }
 0x160   : > { %403 = vst.msk [vmem:[#allocation2 + $0x20] sm:$0xff] %vm358_vm2, %v402_v35 }
 0x161   : > { %413 = vst.msk [vmem:[#allocation2 + $0x28] sm:$0xff] %vm358_vm2, %v412_v37 }
 0x162   : > { %423 = vst.msk [vmem:[#allocation2 + $0x30] sm:$0xff] %vm358_vm2, %v422_v38 }
 0x163   : > { %433 = vst.msk [vmem:[#allocation2 + $0x38] sm:$0xff] %vm358_vm2, %v432_v39 }
 0x164   : > { %v438_v40 = vld [vmem:[#allocation2] sm:$0xff]  ;;  %v443_v41 = vld [vmem:[#allocation2 + $0x8] sm:$0xff]  ;;  %v440_v42 = vstv %s439_s4  ;;  %v445_v45 = vstv %s636_s27  ;;  %v451_v48 = vstv %s638_s8  ;;  %v457_v51 = vstv %s640_s25 }
 0x165   : > { %v449_v43 = vld [vmem:[#allocation2 + $0x10] sm:$0xff]  ;;  %v441_v44 = vadd.f32 %v440_v42, %v438_v40  ;;  %v446_v47 = vadd.f32 %v445_v45, %v443_v41  ;;  %v463_v54 = vstv %s642_s30  ;;  %v469_v57 = vstv %s644_s13 }
 0x166   : > { %v455_v46 = vld [vmem:[#allocation2 + $0x18] sm:$0xff]  ;;  %v452_v50 = vadd.f32 %v451_v48, %v449_v43  ;;  %v475_v60 = vstv %s646_s2  ;;  %v481_v62 = vstv %s648_s21 }
 0x167   : > { %v461_v49 = vld [vmem:[#allocation2 + $0x20] sm:$0xff]  ;;  %442 = vst.msk [vmem:[%s1184_s6] sm:$0xff] %vm358_vm2, %v441_v44  ;;  %v458_v53 = vadd.f32 %v457_v51, %v455_v46 }
 0x168   : > { %v467_v52 = vld [vmem:[#allocation2 + $0x28] sm:$0xff]  ;;  %637 = vst.msk [vmem:[%s1184_s6 + $0x8] sm:$0xff] %vm358_vm2, %v446_v47  ;;  %v464_v56 = vadd.f32 %v463_v54, %v461_v49 }
 0x169   : > { %v473_v55 = vld [vmem:[#allocation2 + $0x30] sm:$0xff]  ;;  %639 = vst.msk [vmem:[%s1184_s6 + $0x10] sm:$0xff] %vm358_vm2, %v452_v50  ;;  %v470_v59 = vadd.f32 %v469_v57, %v467_v52 }
 0x16a   : > { %v479_v58 = vld [vmem:[#allocation2 + $0x38] sm:$0xff]  ;;  %641 = vst.msk [vmem:[%s1184_s6 + $0x18] sm:$0xff] %vm358_vm2, %v458_v53  ;;  %v476_v61 = vadd.f32 %v475_v60, %v473_v55 }
 0x16b   : > { %643 = vst.msk [vmem:[%s1184_s6 + $0x20] sm:$0xff] %vm358_vm2, %v464_v56  ;;  %v482_v63 = vadd.f32 %v481_v62, %v479_v58 }
 0x16c   : > { %645 = vst.msk [vmem:[%s1184_s6 + $0x28] sm:$0xff] %vm358_vm2, %v470_v59 }
 0x16d   : > { %647 = vst.msk [vmem:[%s1184_s6 + $0x30] sm:$0xff] %vm358_vm2, %v476_v61 }
 0x16e   : > { %649 = vst.msk [vmem:[%s1184_s6 + $0x38] sm:$0xff] %vm358_vm2, %v482_v63 }
 0x16f PF: > { %s1330_s24 = sld [smem:[#allocation16_spill]]  ;;  %s498_s10 = sshll.u32 %s1184_s6, 4  ;;  %s499_s10 = int_to_ptr.vmem [resolvable:$true] %s498_s10 }
 0x170   : > { %s1332_s18 = sld [smem:[#allocation29_spill]]  ;;  %s1334_s12 = sand.u32 1, %s952_s19  }
 0x171   : > { %s486_s16 = scalar_lea.sflag [#allocation5], %s1334_s12 }
 0x175   : > { %s669_s3 = sshll.u32 %s1330_s24, 6 }
 0x176   : > { %s1333_s7 = smov %s1332_s18  ;;  %s497_s28 = scalar_lea.hbm %s1332_s18, %s669_s3 }
 0x177   : > { %s500_s11 = sshll.u32 %s497_s28, 4  ;;  %s878_s4 = scalar_lea.hbm %s1333_s7, 128  ;;  %s501_s11 = int_to_ptr.hbm [resolvable:$true] %s500_s11 }
 0x178   : > { %s872_s17 = sshra.s32 %s501_s11, 4  ;;  %s873_s17 = int_to_ptr.hbm [resolvable:$true] %s872_s17 }
 0x179   : > { %s874_s9 = scalar_lea.hbm %s873_s17, 64  ;;  %p879_p2 = scmp.lt.s32.totalorder %s873_s17, %s1333_s7 }
 0x17a   : > { %p875_p13 = scmp.ne.s32.totalorder %s873_s17, %s874_s9  ;;  %p880_p5 = scmp.lt.s32.totalorder %s878_s4, %s874_s9 }
 0x17c   : > { %p876_p0 = pnand %p875_p13, %p1106_p10  ;;  %p881_p7 = por %p880_p5, %p879_p2 }
 0x17e   : > { %p877_p1 = pneg %p876_p0 }
 0x180   : > { %p882_p8 = pnand %p881_p7, %p877_p1 }
 0x182   : > { %885 = shalt.err (!%p882_p8)
}
 0x183   : > { %s995_s6 = smov 128   ;;  %s996_s25 = smov 8  }
 0x184   : > { %680 = dma.vmem_to_hbm [thread:$0]  (%p1106_p10), %s499_s10, 1024, %s501_s11, %s486_s16, %s995_s6, %s995_s6, %s996_s25  }
 0x185 PF: > { %s1335_s30 = sld [smem:[#allocation19_spill]] }
 0x186   : > { %s1336_s13 = sld [smem:[#allocation15_spill]] }
 0x18b   : > { %p702_p4 = scmp.ge.s32.totalorder %s1335_s30, 2 }
 0x18c   : > { %s515_s21 = sand.u32 1, %s1336_s13  }
 0x18d   : > { %p694_p9 = pnand %p702_p4, %p1111_p12  ;;  %s516_s24 = scalar_lea.sflag [#allocation5], %s515_s21 }
 0x18f   : > { %p695_p11 = pneg %p694_p9 }
 0x191   : > { %943 = dma.done.wait (%p695_p11), %s516_s24, 1024  }
 0x192   : > { %945 = vsyncadd (%p695_p11), %s516_s24, 4294966272  ;;  %s23_s28 = sadd.s32 1, %s1335_s30   ;;  %s1338_s24 = sld [smem:[#allocation17_spill]] }
 0x193   : > { %p20_p3 = scmp.ge.s32.totalorder %s23_s28, 10   ;;  %s1339_s25 = sld [smem:[#allocation18_spill]] }
 0x194   : > { %s1340_s15 = sld [smem:[#allocation22_spill]]  ;;  %s1342_s18 = smov %s952_s19 }
 0x195   : > { %s1341_s27 = sld [smem:[#allocation23_spill]]  ;;  %s1343_s19 = smov %s956_s20 }
 0x196   : > { %s1344_s20 = smov %s1157_s26  ;;  %s1345_s21 = smov %s964_s22 }
 0x197   : > { %s1346_s22 = smov %s968_s23  ;;  %s1347_s23 = smov %s1162_s1 }
 0x198   :  { %22 = sbr.rel (!%p20_p3) target bundleno = 18 (0x12), region = 116 }
 0x19a   : > { %s1348_s26 = smov %s1340_s15 }
 0x19d   :  { %522 = vsyncpa [#allocation4], 1 }
 0x19e   :  { %524 = vsyncpa [#allocation4 + $0x1], 1 }
 0x19f   :  { %525 = vsyncpa [#allocation5], 1 }
 0x1a0   :  { %527 = vsyncpa [#allocation5 + $0x1], 1 }
 0x1a1   :  { %528 = vsyncpa [#allocation6], 1 }
 0x1a2   :  { %530 = vsyncpa [#allocation6 + $0x1], 1 }
 0x1a3   :  { %531 = vsyncpa [#allocation8], 1 }

</bundles_post_ra>
